<compile_context>
chip_gen: v7x
topology: tpu7x:2x2x1
jax: 0.10.0
libtpu: 0.0.40
codegen_flags: <defaults>
</compile_context>

<pallas_src>
import jax
import jax.numpy as jnp
from jax.experimental import pallas as pl
from jax.experimental.pallas import tpu as pltpu

# Model dims (synthetic, small).
C_IN = 4     # input channels
D_FEAT = 32  # backbone feature dim
K_OUT = 16   # head output dim


def _consecutive_groups(crops):
    """torch.unique_consecutive(shape[-1], return_counts=True) equivalent.

    Returns a list of (start, end) crop-index ranges of consecutive
    same-width runs.
    """
    groups, start = [], 0
    for i in range(1, len(crops) + 1):
        if i == len(crops) or int(crops[i].shape[-1]) != int(crops[start].shape[-1]):
            groups.append((start, i))
            start = i
    return groups


def _make_kernel(n_groups):
    """Fused backbone+head kernel over a fixed number of resolution groups.

    Ref layout (positional):
      x_0..x_{n_groups-1} : [rows_g, C, HW_g]  group pixels (NCHW flattened)
      wb : [C, D], bb : [1, D], wh : [D, K], bh : [1, K]
      o_0..o_{n_groups-1} : [rows_g, K]        per-group head outputs
    """

    def kernel(*refs):
        x_refs = refs[:n_groups]
        wb_ref, bb_ref, wh_ref, bh_ref = refs[n_groups:n_groups + 4]
        o_refs = refs[n_groups + 4:]

        # Static (unrolled) loop over resolution groups: no grid overhead,
        # no pl.when dispatch ladder.
        for x_ref, o_ref in zip(x_refs, o_refs):
            # Backbone: global-average-pool over H*W (XLU lane reduce), then
            # Linear(C->D) against the resident wb (MXU), then GELU (EUP).
            pooled = jnp.mean(x_ref[...], axis=-1)                  # [rows, C]
            pre = jnp.dot(pooled, wb_ref[...],
                          preferred_element_type=jnp.float32) + bb_ref[...]
            feat = jax.nn.gelu(pre, approximate=True)
            # Head: Linear(D->K).
            out = jnp.dot(feat, wh_ref[...],
                          preferred_element_type=jnp.float32) + bh_ref[...]
            o_ref[...] = out.astype(o_ref.dtype)                    # full-block store

    return kernel


def multi_crop_forward(crops, params):
    """JAX/Pallas equivalent of MultiCropWrapper.forward.

    crops: list of NCHW arrays (shared batch B and channels C, possibly
    different H, W).  Returns a tuple of n_crops arrays [B, K_OUT]
    (== out.chunk(n_crops)).
    """
    wb, bb, wh, bh = params
    n_crops = len(crops)
    B, C = int(crops[0].shape[0]), int(crops[0].shape[1])
    for c in crops:
        # The in-kernel GAP relies on NCHW contiguity of the [rows, C, H*W] view.
        assert c.ndim == 4 and int(c.shape[0]) == B and int(c.shape[1]) == C, (
            "crops must be NCHW with a shared batch / channel count")

    groups = _consecutive_groups(crops)
    n_groups = len(groups)

    # The module's own per-group torch.cat, plus a free contiguous reshape to
    # [rows_g, C, H*W] so the kernel's GAP is one lane-axis reduce per group
    # and the backbone matmul sees M = group_size*B rows at once.
    xs, group_rows = [], []
    for (s, e) in groups:
        h, w = int(crops[s].shape[-2]), int(crops[s].shape[-1])
        assert all(int(c.shape[-2]) == h and int(c.shape[-1]) == w
                   for c in crops[s:e]), "crops grouped by width must share H, W"
        rows = (e - s) * B
        xs.append(jnp.concatenate(crops[s:e], axis=0).reshape(rows, C, h * w))
        group_rows.append(rows)

    vmem = pltpu.MemorySpace.VMEM
    group_outs = pl.pallas_call(
        _make_kernel(n_groups),
        out_shape=tuple(jax.ShapeDtypeStruct((r, K_OUT), jnp.float32)
                        for r in group_rows),
        # No grid: single invocation, every operand is a whole-array VMEM
        # block, DMA'd exactly once (nothing is double-buffered).
        in_specs=[pl.BlockSpec(memory_space=vmem)] * (n_groups + 4),
        out_specs=tuple(pl.BlockSpec(memory_space=vmem)
                        for _ in range(n_groups)),
    )(*xs, wb, bb, wh, bh)

    # out.chunk(n_crops): crop j is B consecutive rows of its group's output.
    chunks = []
    for g, (s, e) in enumerate(groups):
        for k in range(e - s):
            chunks.append(group_outs[g][k * B:(k + 1) * B])
    return tuple(chunks)


def init_params(key):
    k1, k2, k3, k4 = jax.random.split(key, 4)
    wb = jax.random.normal(k1, (C_IN, D_FEAT), jnp.float32) * 0.1
    bb = jax.random.normal(k2, (1, D_FEAT), jnp.float32) * 0.01
    wh = jax.random.normal(k3, (D_FEAT, K_OUT), jnp.float32) * 0.1
    bh = jax.random.normal(k4, (1, K_OUT), jnp.float32) * 0.01
    return wb, bb, wh, bh


if __name__ == "__main__":
    key = jax.random.PRNGKey(0)
    pkey, xkey = jax.random.split(key)
    params = init_params(pkey)

    # 2 "global" crops at 16x16 and 2 "local" crops at 8x8, batch=2, C=4 (NCHW).
    xk = jax.random.split(xkey, 4)
    crops = [
        jax.random.normal(xk[0], (2, C_IN, 16, 16), jnp.float32),
        jax.random.normal(xk[1], (2, C_IN, 16, 16), jnp.float32),
        jax.random.normal(xk[2], (2, C_IN, 8, 8), jnp.float32),
        jax.random.normal(xk[3], (2, C_IN, 8, 8), jnp.float32),
    ]

    outs = multi_crop_forward(crops, params)
    outs = jax.block_until_ready(outs)

    # Sanity: n_crops chunks, each [B, K_OUT].
    assert len(outs) == len(crops)
    assert all(o.shape == (2, K_OUT) for o in outs)

    # Pure-JAX reference mirroring the module exactly:
    # per-group cat -> backbone -> concat features -> head -> chunk(n_crops).
    wb, bb, wh, bh = params

    def backbone_ref(xg):
        pooled = jnp.mean(xg.reshape(xg.shape[0], C_IN, -1), axis=-1)
        return jax.nn.gelu(pooled @ wb + bb, approximate=True)

    feats = [backbone_ref(jnp.concatenate(crops[s:e], axis=0))
             for (s, e) in _consecutive_groups(crops)]
    ref = jnp.concatenate(feats, axis=0) @ wh + bh
    ref_chunks = jnp.split(ref, len(crops), axis=0)

    for got, want in zip(outs, ref_chunks):
        assert jnp.allclose(got, want, atol=1e-4, rtol=1e-4), (
            float(jnp.max(jnp.abs(got - want))))

    print("KERNEL_OK")
</pallas_src>

<mosaic_0001>
module attributes {stable_mosaic.version = 11 : i64} {
  func.func @kernel(%arg0: memref<4x4x256xf32, #tpu.memory_space<vmem>>, %arg1: memref<4x4x64xf32, #tpu.memory_space<vmem>>, %arg2: memref<4x32xf32, #tpu.memory_space<vmem>>, %arg3: memref<1x32xf32, #tpu.memory_space<vmem>>, %arg4: memref<32x16xf32, #tpu.memory_space<vmem>>, %arg5: memref<1x16xf32, #tpu.memory_space<vmem>>, %arg6: memref<4x16xf32, #tpu.memory_space<vmem>>, %arg7: memref<4x16xf32, #tpu.memory_space<vmem>>) attributes {dimension_semantics = [], scalar_prefetch = 0 : i64, scratch_operands = 0 : i64, tpu.core_type = #tpu.core_type<tc>} {
    %c0 = arith.constant 0 : index
    %c0_0 = arith.constant 0 : index
    %c0_1 = arith.constant 0 : index
    %0 = vector.load %arg0[%c0, %c0_0, %c0_1] : memref<4x4x256xf32, #tpu.memory_space<vmem>>, vector<4x4x256xf32>
    %cst = arith.constant dense<0.000000e+00> : vector<4x4xf32>
    %1 = vector.multi_reduction <add>, %0, %cst [2] : vector<4x4x256xf32> to vector<4x4xf32>
    %cst_2 = arith.constant 2.560000e+02 : f32
    %2 = vector.broadcast %cst_2 : f32 to vector<4x4xf32>
    %3 = arith.divf %1, %2 : vector<4x4xf32>
    %c0_3 = arith.constant 0 : index
    %c0_4 = arith.constant 0 : index
    %4 = vector.load %arg2[%c0_3, %c0_4] : memref<4x32xf32, #tpu.memory_space<vmem>>, vector<4x32xf32>
    %cst_5 = arith.constant dense<0.000000e+00> : vector<4x32xf32>
    %5 = tpu.matmul %3, %4, %cst_5 {dimension_numbers = #tpu.dot_dimension_numbers<[1], [0], [0], [1], [0, 0, 1, 1], [], []>} : vector<4x4xf32>, vector<4x32xf32>, vector<4x32xf32> -> vector<4x32xf32>
    %c0_6 = arith.constant 0 : index
    %c0_7 = arith.constant 0 : index
    %6 = vector.load %arg3[%c0_6, %c0_7] : memref<1x32xf32, #tpu.memory_space<vmem>>, vector<1x32xf32>
    %7 = vector.broadcast %6 : vector<1x32xf32> to vector<4x32xf32>
    %8 = arith.addf %5, %7 : vector<4x32xf32>
    %9 = arith.mulf %8, %8 : vector<4x32xf32>
    %10 = arith.mulf %8, %9 : vector<4x32xf32>
    %cst_8 = arith.constant 4.471500e-02 : f32
    %11 = vector.broadcast %cst_8 : f32 to vector<4x32xf32>
    %12 = arith.mulf %11, %10 : vector<4x32xf32>
    %13 = arith.addf %8, %12 : vector<4x32xf32>
    %cst_9 = arith.constant 0.797884583 : f32
    %14 = vector.broadcast %cst_9 : f32 to vector<4x32xf32>
    %15 = arith.mulf %14, %13 : vector<4x32xf32>
    %16 = math.tanh %15 : vector<4x32xf32>
    %cst_10 = arith.constant 1.000000e+00 : f32
    %17 = vector.broadcast %cst_10 : f32 to vector<4x32xf32>
    %18 = arith.addf %17, %16 : vector<4x32xf32>
    %cst_11 = arith.constant 5.000000e-01 : f32
    %19 = vector.broadcast %cst_11 : f32 to vector<4x32xf32>
    %20 = arith.mulf %19, %18 : vector<4x32xf32>
    %21 = arith.mulf %8, %20 : vector<4x32xf32>
    %c0_12 = arith.constant 0 : index
    %c0_13 = arith.constant 0 : index
    %22 = vector.load %arg4[%c0_12, %c0_13] : memref<32x16xf32, #tpu.memory_space<vmem>>, vector<32x16xf32>
    %cst_14 = arith.constant dense<0.000000e+00> : vector<4x16xf32>
    %23 = tpu.matmul %21, %22, %cst_14 {dimension_numbers = #tpu.dot_dimension_numbers<[1], [0], [0], [1], [0, 0, 1, 1], [], []>} : vector<4x32xf32>, vector<32x16xf32>, vector<4x16xf32> -> vector<4x16xf32>
    %c0_15 = arith.constant 0 : index
    %c0_16 = arith.constant 0 : index
    %24 = vector.load %arg5[%c0_15, %c0_16] : memref<1x16xf32, #tpu.memory_space<vmem>>, vector<1x16xf32>
    %25 = vector.broadcast %24 : vector<1x16xf32> to vector<4x16xf32>
    %26 = arith.addf %23, %25 : vector<4x16xf32>
    %c0_17 = arith.constant 0 : index
    %c0_18 = arith.constant 0 : index
    %27 = vector.load %arg6[%c0_17, %c0_18] : memref<4x16xf32, #tpu.memory_space<vmem>>, vector<4x16xf32>
    tpu.vector_store %arg6[%c0_17, %c0_18], %26 {strides = array<i32>} : memref<4x16xf32, #tpu.memory_space<vmem>>, vector<4x16xf32>,
    %c0_19 = arith.constant 0 : index
    %c0_20 = arith.constant 0 : index
    %c0_21 = arith.constant 0 : index
    %28 = vector.load %arg1[%c0_19, %c0_20, %c0_21] : memref<4x4x64xf32, #tpu.memory_space<vmem>>, vector<4x4x64xf32>
    %cst_22 = arith.constant dense<0.000000e+00> : vector<4x4xf32>
    %29 = vector.multi_reduction <add>, %28, %cst_22 [2] : vector<4x4x64xf32> to vector<4x4xf32>
    %cst_23 = arith.constant 6.400000e+01 : f32
    %30 = vector.broadcast %cst_23 : f32 to vector<4x4xf32>
    %31 = arith.divf %29, %30 : vector<4x4xf32>
    %c0_24 = arith.constant 0 : index
    %c0_25 = arith.constant 0 : index
    %32 = vector.load %arg2[%c0_24, %c0_25] : memref<4x32xf32, #tpu.memory_space<vmem>>, vector<4x32xf32>
    %cst_26 = arith.constant dense<0.000000e+00> : vector<4x32xf32>
    %33 = tpu.matmul %31, %32, %cst_26 {dimension_numbers = #tpu.dot_dimension_numbers<[1], [0], [0], [1], [0, 0, 1, 1], [], []>} : vector<4x4xf32>, vector<4x32xf32>, vector<4x32xf32> -> vector<4x32xf32>
    %c0_27 = arith.constant 0 : index
    %c0_28 = arith.constant 0 : index
    %34 = vector.load %arg3[%c0_27, %c0_28] : memref<1x32xf32, #tpu.memory_space<vmem>>, vector<1x32xf32>
    %35 = vector.broadcast %34 : vector<1x32xf32> to vector<4x32xf32>
    %36 = arith.addf %33, %35 : vector<4x32xf32>
    %37 = arith.mulf %36, %36 : vector<4x32xf32>
    %38 = arith.mulf %36, %37 : vector<4x32xf32>
    %cst_29 = arith.constant 4.471500e-02 : f32
    %39 = vector.broadcast %cst_29 : f32 to vector<4x32xf32>
    %40 = arith.mulf %39, %38 : vector<4x32xf32>
    %41 = arith.addf %36, %40 : vector<4x32xf32>
    %cst_30 = arith.constant 0.797884583 : f32
    %42 = vector.broadcast %cst_30 : f32 to vector<4x32xf32>
    %43 = arith.mulf %42, %41 : vector<4x32xf32>
    %44 = math.tanh %43 : vector<4x32xf32>
    %cst_31 = arith.constant 1.000000e+00 : f32
    %45 = vector.broadcast %cst_31 : f32 to vector<4x32xf32>
    %46 = arith.addf %45, %44 : vector<4x32xf32>
    %cst_32 = arith.constant 5.000000e-01 : f32
    %47 = vector.broadcast %cst_32 : f32 to vector<4x32xf32>
    %48 = arith.mulf %47, %46 : vector<4x32xf32>
    %49 = arith.mulf %36, %48 : vector<4x32xf32>
    %c0_33 = arith.constant 0 : index
    %c0_34 = arith.constant 0 : index
    %50 = vector.load %arg4[%c0_33, %c0_34] : memref<32x16xf32, #tpu.memory_space<vmem>>, vector<32x16xf32>
    %cst_35 = arith.constant dense<0.000000e+00> : vector<4x16xf32>
    %51 = tpu.matmul %49, %50, %cst_35 {dimension_numbers = #tpu.dot_dimension_numbers<[1], [0], [0], [1], [0, 0, 1, 1], [], []>} : vector<4x32xf32>, vector<32x16xf32>, vector<4x16xf32> -> vector<4x16xf32>
    %c0_36 = arith.constant 0 : index
    %c0_37 = arith.constant 0 : index
    %52 = vector.load %arg5[%c0_36, %c0_37] : memref<1x16xf32, #tpu.memory_space<vmem>>, vector<1x16xf32>
    %53 = vector.broadcast %52 : vector<1x16xf32> to vector<4x16xf32>
    %54 = arith.addf %51, %53 : vector<4x16xf32>
    %c0_38 = arith.constant 0 : index
    %c0_39 = arith.constant 0 : index
    %55 = vector.load %arg7[%c0_38, %c0_39] : memref<4x16xf32, #tpu.memory_space<vmem>>, vector<4x16xf32>
    tpu.vector_store %arg7[%c0_38, %c0_39], %54 {strides = array<i32>} : memref<4x16xf32, #tpu.memory_space<vmem>>, vector<4x16xf32>,
    return
  }
}

</mosaic_0001>

<bundles_post_ra>
// kernel: tpu_custom_call.1
= control target key start
LH: loop header
LB: loop body
LE: loop exit
PB: predicated region body
PF: predicated region fallthrough
CT: control target
= control target key end

     0   :  { %13 = vsyncpa [#allocation3], 0  ;;  %vm281_vm0 = vcmask 519168   ;;  %vm43_vm1 = vcmask 1043456   ;;  %s799_s0 = inlined_call_operand.vmem [shape: f32[4,4,256], index: 0, kind: input, shape index: {}]   ;;  %s800_s1 = inlined_call_operand.vmem [shape: f32[4,4,64], index: 1, kind: input, shape index: {}]   ;;  %s801_s2 = inlined_call_operand.vmem [shape: f32[4,32], index: 2, kind: input, shape index: {}]   ;;  %s802_s3 = inlined_call_operand.vmem [shape: f32[1,32], index: 3, kind: input, shape index: {}]   ;;  %s803_s4 = inlined_call_operand.vmem [shape: f32[32,16], index: 4, kind: input, shape index: {}]   ;;  %s804_s5 = inlined_call_operand.vmem [shape: f32[1,16], index: 5, kind: input, shape index: {}]   ;;  %s805_s6 = inlined_call_operand.hbm [shape: f32[4,16], index: 6, kind: output, shape index: {0}]   ;;  %s806_s7 = inlined_call_operand.hbm [shape: f32[4,16], index: 7, kind: output, shape index: {1}]  }
   0x1   :  { %v277_v0 = vld [vmem:[%s800_s1] sm:$0xf]  ;;  %v278_v1 = vld [vmem:[%s800_s1 + $0x4] sm:$0xf]  ;;  %v28_v5 = vld [vmem:[%s799_s0 + $0x8] sm:$0xff] }
   0x2   :  { %v27_v2 = vld [vmem:[%s799_s0] sm:$0xff]  ;;  %v282_v3 = vsel %vm281_vm0, %v277_v0, 0.0  ;;  %v36_v7 = vcombine.high %v28_v5, %v28_v5  ;;  %v29_v8 = vld [vmem:[%s799_s0 + $0x10] sm:$0xff]  ;;  %v285_v9 = vsel %vm281_vm0, %v278_v1, 0.0  ;;  %v49_v11 = vsel %vm43_vm1, %v28_v5, 0.0 }
   0x3   :  { %v35_v4 = vcombine.high %v27_v2, %v27_v2  ;;  %283 = vadd.xlane.f32.xlu1 %v282_v3  ;;  %v44_v6 = vsel %vm43_vm1, %v27_v2, 0.0  ;;  %v37_v12 = vcombine.high %v29_v8, %v29_v8 }
   0x5   :  { %v45_v10 = vsel %vm43_vm1, %v35_v4, 0.0 }
   0x6   :  { %14 = vsyncpa [#allocation5], 0  ;;  %v46_v13 = vadd.f32 %v45_v10, %v44_v6  ;;  %v279_v14 = vld [vmem:[%s800_s1 + $0x8] sm:$0xf]  ;;  %v50_v15 = vsel %vm43_vm1, %v36_v7, 0.0  ;;  %v30_v16 = vld [vmem:[%s799_s0 + $0x18] sm:$0xff]  ;;  %v81_v31 = vlaneseq }
   0x7   :  { %286 = vadd.xlane.f32.xlu1 %v285_v9  ;;  %v51_v17 = vadd.f32 %v50_v15, %v49_v11  ;;  %v288_v18 = vsel %vm281_vm0, %v279_v14, 0.0  ;;  %v54_v19 = vsel %vm43_vm1, %v29_v8, 0.0  ;;  %v55_v20 = vsel %vm43_vm1, %v37_v12, 0.0  ;;  %v280_v22 = vld [vmem:[%s800_s1 + $0xc] sm:$0xf]  ;;  %v414_v1 = vld [vmem:[%s803_s4] sm:$0xff] }
   0x8   :  { %47 = vadd.xlane.f32.xlu0 %v46_v13  ;;  %v38_v21 = vcombine.high %v30_v16, %v30_v16  ;;  %v56_v23 = vadd.f32 %v55_v20, %v54_v19  ;;  %v291_v24 = vsel %vm281_vm0, %v280_v22, 0.0  ;;  %v59_v25 = vsel %vm43_vm1, %v30_v16, 0.0  ;;  %v299_v29 = vld [vmem:[%s801_s2] sm:$0xf]  ;;  %v415_v2 = vld [vmem:[%s803_s4 + $0x8] sm:$0xff]  ;;  %v416_v5 = vld [vmem:[%s803_s4 + $0x10] sm:$0xff] }
   0x9   :  { %v656_v28 = vmov 0.0   ;;  %vm657_vm2 = vmmov 0   ;;  %v69_v30 = vld [vmem:[%s801_s2] sm:$0xf]  ;;  %v82_v33 = vand.u32 127, %v81_v31  ;;  %v84_v34 = vshrl.u32 %v81_v31, 7 }
   0xa   :  { %v60_v26 = vsel %vm43_vm1, %v38_v21, 0.0  ;;  %567 = vmatprep.subr.mxu0 %v656_v28  ;;  %551 = vmatprep.subr.mxu1 %v656_v28  ;;  %vm99_vm3 = vcmask 1041409   ;;  %vm101_vm4 = vcmask 1042434   ;;  %vm103_vm5 = vcmask 1043459   ;;  %v417_v6 = vld [vmem:[%s803_s4 + $0x18] sm:$0xff]  ;;  %s659_s28 = smov [#allocation4]  }
   0xb   :  { %289 = vadd.xlane.f32.xlu1 %v288_v18  ;;  %v61_v27 = vadd.f32 %v60_v26, %v59_v25  ;;  %568 = vmatpush3.msk.msra.mxu0 %vm43_vm1, %v299_v29  ;;  %v85_v37 = vsub.s32 %v82_v33, %v84_v34  ;;  %vm105_vm6 = vcmask 31744   ;;  %v590_v3 = vpack.c.bf16 %v415_v2, %v414_v1  ;;  %v532_v8 = vld [vmem:[%s802_s3] ss:$0 sm:$0xff]  ;;  %s515_s29 = sshll.u32 %s659_s28, 4  ;;  %s660_s30 = smov [#allocation2]   ;;  %s516_s29 = int_to_ptr.vmem [resolvable:$true] %s515_s29 }
   0xc   :  { %52 = vadd.xlane.f32.xlu0 %v51_v17  ;;  %569 = vmatprep.mubr.msk.f32.mxu0 %vm657_vm2, %v656_v28  ;;  %v658_v4 = vmov 0.0|0.0   ;;  %v593_v7 = vpack.c.bf16 %v417_v6, %v416_v5  ;;  %vm201_vm7 = vcmask 261120   ;;  %v535_v33 = vld [vmem:[%s804_s5] ss:$0 sm:$0xff]  ;;  %vm275_vm8 = vcmask 125952   ;;  %s505_s8 = sshll.u32 %s660_s30, 4  ;;  %p613_p1 = scmp.lt.s32.totalorder %s516_s29, %s516_s29  ;;  %s506_s8 = int_to_ptr.vmem [resolvable:$true] %s505_s8 }
   0xd   :  { %553 = vmatprep.mubr.msk.f32.mxu1 %vm657_vm2, %v656_v28  ;;  %552 = vmatpush3.msk.msra.mxu1 %vm43_vm1, %v69_v30  ;;  %s608_s9 = scalar_lea.vmem %s516_s29, 64 }
   0xe   :  { %589 = vmatprep.subr.bf16.mxu0 %v658_v4  ;;  %583 = vmatprep.subr.bf16.mxu1 %v658_v4  ;;  %p609_p0 = scmp.ne.s32.totalorder %s516_s29, %s608_s9  ;;  %p614_p2 = scmp.lt.s32.totalorder %s608_s9, %s608_s9 }
   0xf   :  { %292 = vadd.xlane.f32.xlu1 %v291_v24 }
  0x10   :  { %57 = vadd.xlane.f32.xlu0 %v56_v23  ;;  %p615_p3 = por %p614_p2, %p613_p1 }
  0x12   :  { %p616_p4 = pnand %p615_p3, %p609_p0 }
  0x14   :  { %62 = vadd.xlane.f32.xlu0 %v61_v27 }
  0x90   :  { %v284_v32 = vpop.xlane.xlu1 %283 }
  0x91   :  { %v295_v38 = vmul.f32 0.015625, %v284_v32 }
  0x93   :  { %v314_v43 = vrot.slane %v295_v38, %v85_v37 }
  0x94   :  { %v287_v35 = vpop.xlane.xlu1 %286 }
  0x95   :  { %v48_v36 = vpop.xlane.xlu0 %47  ;;  %v296_v39 = vmul.f32 0.015625, %v287_v35 }
  0x96   :  { %v65_v49 = vmul.f32 0.00390625, %v48_v36 }
  0x97   :  { %v318_v44 = vrot.slane %v296_v39, %v85_v37 }
  0x98   :  { %v290_v40 = vpop.xlane.xlu1 %289  ;;  %v86_v58 = vrot.slane %v65_v49, %v85_v37 }
  0x99   :  { %v53_v41 = vpop.xlane.xlu0 %52  ;;  %v297_v42 = vmul.f32 0.015625, %v290_v40  ;;  %v327_v52 = vsel %vm99_vm3, %v318_v44, %v314_v43 }
  0x9a   :  { %v66_v45 = vmul.f32 0.00390625, %v53_v41 }
  0x9b   :  { %v322_v46 = vrot.slane %v297_v42, %v85_v37 }
  0x9c   :  { %v293_v47 = vpop.xlane.xlu1 %292  ;;  %v90_v53 = vrot.slane %v66_v45, %v85_v37 }
  0x9d   :  { %v58_v48 = vpop.xlane.xlu0 %57  ;;  %v298_v50 = vmul.f32 0.015625, %v293_v47  ;;  %v328_v57 = vsel %vm101_vm4, %v322_v46, %v327_v52 }
  0x9e   :  { %v67_v51 = vmul.f32 0.00390625, %v58_v48  ;;  %v100_v61 = vsel %vm99_vm3, %v90_v53, %v86_v58 }
  0x9f   :  { %v326_v54 = vrot.slane %v298_v50, %v85_v37 }
  0xa0   :  { %v94_v55 = vrot.slane %v67_v51, %v85_v37 }
  0xa1   :  { %v63_v56 = vpop.xlane.xlu0 %62  ;;  %v329_v60 = vsel %vm103_vm5, %v326_v54, %v328_v57 }
  0xa2   :  { %v68_v59 = vmul.f32 0.00390625, %v63_v56  ;;  %570 = vmatmul.mubr.msk.f32.vlgmr.msra.gmra.mrb[0].mxu0 %vm105_vm6, %v329_v60  ;;  %v102_v63 = vsel %vm101_vm4, %v94_v55, %v100_v61 }
  0xa3   :  { %580 = vmatprep.mubr.msk.f32.mxu0 %vm657_vm2, %v656_v28  ;;  %591 = vmatpush3.bf16.msra.mxu0 %v590_v3 }
  0xa4   :  { %v98_v62 = vrot.slane %v68_v59, %v85_v37  ;;  %592 = vmatprep.subr.bf16.mxu0 %v658_v4 }
  0xa6   :  { %v104_v0 = vsel %vm103_vm5, %v98_v62, %v102_v63 }
  0xa7   :  { %554 = vmatmul.mubr.msk.f32.vlgmr.msra.gmra.mrb[0].mxu1 %vm105_vm6, %v104_v0  ;;  %594 = vmatpush3.bf16.msra.mxu0 %v593_v7 }
  0xa8   :  { %564 = vmatprep.mubr.msk.f32.mxu1 %vm657_vm2, %v656_v28  ;;  %585 = vmatpush3.bf16.msra.mxu1 %v590_v3 }
  0xa9   :  { %586 = vmatprep.subr.bf16.mxu1 %v658_v4 }
  0xac   :  { %588 = vmatpush3.bf16.msra.mxu1 %v593_v7 }
 0x175   :  { %v401_v9 = vpop.f32.mrb[0].mxu0 }
 0x176   :  { %v402_v10 = vadd.f32 %v532_v8, %v401_v9  ;;  %v571_v11 = vpop.f32.mrb[1].mxu0 }
 0x178   :  { %v405_v12 = vmul.f32 %v402_v10, %v402_v10 }
 0x17a   :  { %v177_v13 = vpop.f32.mrb[0].mxu1  ;;  %v406_v14 = vmul.f32 %v405_v12, %v402_v10 }
 0x17b   :  { %v178_v15 = vadd.f32 %v532_v8, %v177_v13  ;;  %v555_v16 = vpop.f32.mrb[1].mxu1 }
 0x17c   :  { %v407_v17 = vmul.f32 0.044715, %v406_v14 }
 0x17d   :  { %v181_v18 = vmul.f32 %v178_v15, %v178_v15 }
 0x17e   :  { %v408_v19 = vadd.f32 %v407_v17, %v402_v10 }
 0x17f   :  { %v182_v20 = vmul.f32 %v181_v18, %v178_v15 }
 0x180   :  { %v409_v21 = vmul.f32 0.7978846, %v408_v19 }
 0x181   :  { %v183_v22 = vmul.f32 0.044715, %v182_v20 }
 0x182   :  { %604 = vtanh.f32 %v409_v21 }
 0x183   :  { %v184_v23 = vadd.f32 %v183_v22, %v178_v15 }
 0x185   :  { %v185_v24 = vmul.f32 0.7978846, %v184_v23 }
 0x187   :  { %606 = vtanh.f32 %v185_v24 }
 0x18c   :  { %v605_v25 = vpop.eup %604 }
 0x18d   :  { %v411_v26 = vadd.f32 1.0, %v605_v25 }
 0x18f   :  { %v412_v27 = vmul.f32 0.5, %v411_v26 }
 0x191   :  { %v607_v28 = vpop.eup %606  ;;  %v413_v29 = vmul.f32 %v412_v27, %v402_v10 }
 0x192   :  { %v187_v30 = vadd.f32 1.0, %v607_v28 }
 0x193   :  { %581 = vmatmul.mubr.msk.f32.vlgmr.msra.gmra.mrb[2].mxu0 %vm201_vm7, %v413_v29 }
 0x194   :  { %v188_v31 = vmul.f32 0.5, %v187_v30 }
 0x196   :  { %v189_v32 = vmul.f32 %v188_v31, %v178_v15 }
 0x198   :  { %565 = vmatmul.mubr.msk.f32.vlgmr.msra.gmra.mrb[2].mxu1 %vm201_vm7, %v189_v32 }
 0x266   :  { %v494_v34 = vpop.f32.mrb[2].mxu0 }
 0x267   :  { %v495_v35 = vadd.f32 %v535_v33, %v494_v34  ;;  %v582_v36 = vpop.f32.mrb[3].mxu0 }
 0x269   :  { %498 = vst.msk [vmem:[#allocation4] sm:$0xf] %vm275_vm8, %v495_v35 }
 0x26b   :  { %v271_v37 = vpop.f32.mrb[2].mxu1 }
 0x26c   :  { %619 = shalt.err (!%p616_p4)
}
 0x26d   :  { %s620_s11 = scalar_lea.hbm %s806_s7, 64 }
 0x26e   :  { %p621_p5 = scmp.ne.s32.totalorder %s806_s7, %s620_s11  ;;  %p624_p6 = scmp.lt.u32.totalorder %s620_s11, %s806_s7 }
 0x270   :  { %p626_p7 = pnand %p624_p6, %p621_p5 }
 0x272   :  { %629 = shalt.err (!%p626_p7)
}
 0x273   :  { %518 = dma.vmem_to_hbm [thread:$0]  %s516_s29, 64, %s806_s7, [#allocation5]   ;;  %v272_v38 = vadd.f32 %v535_v33, %v271_v37  ;;  %v566_v39 = vpop.f32.mrb[3].mxu1 }
 0x274   :  { %s630_s17 = scalar_lea.vmem %s506_s8, 64  ;;  %p635_p9 = scmp.lt.s32.totalorder %s506_s8, %s506_s8 }
 0x275   :  { %276 = vst.msk [vmem:[#allocation2] sm:$0xf] %vm275_vm8, %v272_v38  ;;  %p631_p8 = scmp.ne.s32.totalorder %s506_s8, %s630_s17  ;;  %p636_p10 = scmp.lt.s32.totalorder %s630_s17, %s630_s17 }
 0x277   :  { %p637_p11 = por %p636_p10, %p635_p9 }
 0x279   :  { %p638_p12 = pnand %p637_p11, %p631_p8 }
 0x27b   :  { %641 = shalt.err (!%p638_p12)
}
 0x27c   :  { %s642_s2 = scalar_lea.hbm %s805_s6, 64 }
 0x27d   :  { %p643_p13 = scmp.ne.s32.totalorder %s805_s6, %s642_s2  ;;  %p646_p0 = scmp.lt.u32.totalorder %s642_s2, %s805_s6 }
 0x27f   :  { %p648_p1 = pnand %p646_p0, %p643_p13 }
 0x281   :  { %651 = shalt.err (!%p648_p1)
}
 0x282   :  { %508 = dma.vmem_to_hbm [thread:$0]  %s506_s8, 64, %s805_s6, [#allocation3]  }
 0x283   :  { %652 = dma.done.wait [#allocation3], 64  }
 0x284   :  { %653 = vsyncadd [#allocation3], 4294967232 }
 0x285   :  { %654 = dma.done.wait [#allocation5], 64  }
 0x286   :  { %655 = vsyncadd [#allocation5], 4294967232 }
 0x287   :  { %525 = vsyncpa [#allocation3], 1 }
 0x288   :  { %526 = vsyncpa [#allocation5], 1 }

</bundles_post_ra>
